<compile_context>
chip_gen: v7x
topology: tpu7x:2x2x1
jax: 0.10.0
libtpu: 0.0.40
codegen_flags: <defaults>
</compile_context>

<pallas_src>
import functools

import jax
import jax.numpy as jnp
from jax.experimental import pallas as pl
from jax.experimental.pallas import tpu as pltpu

_LANE = 128
_SUBLANE = 8
_NEG_PAD_BIAS = -1e30  # fc3 bias pad: exp(pad - max) underflows to exactly 0


def _round_up(n, m):
    return ((n + m - 1) // m) * m


def _viterbinet_kernel(x_ref, w1_ref, b1_ref, w2_ref, b2_ref, w3_ref, b3_ref,
                       *rest, apply_mask, drop_all):
    """Forward pass for one (tile_n, D_in) batch tile; all operands resident in VMEM."""
    if apply_mask:
        m1_ref, m2_ref, out_ref = rest
    else:
        (out_ref,) = rest

    x = x_ref[...].astype(jnp.bfloat16)

    # ---- fc1 + tanh ----------------------------------------------------------
    h1 = jnp.tanh(
        jnp.dot(x, w1_ref[...], preferred_element_type=jnp.float32) + b1_ref[...]
    )

    # ---- dropout 1 (inverted dropout; 1/(1-p) scale folded into w2 in wrapper)
    if apply_mask:
        h1 = h1 * m1_ref[...].astype(jnp.float32)
    elif drop_all:  # p == 1.0: everything is dropped
        h1 = jnp.zeros_like(h1)

    # ---- fc2 + relu ----------------------------------------------------------
    h2 = jnp.maximum(
        jnp.dot(h1.astype(jnp.bfloat16), w2_ref[...],
                preferred_element_type=jnp.float32) + b2_ref[...],
        0.0,
    )

    # ---- dropout 2 -----------------------------------------------------------
    if apply_mask:
        h2 = h2 * m2_ref[...].astype(jnp.float32)
    elif drop_all:
        h2 = jnp.zeros_like(h2)

    # ---- fc3 + log_softmax (padded logit columns carry a huge negative bias) --
    z = jnp.dot(h2.astype(jnp.bfloat16), w3_ref[...],
                preferred_element_type=jnp.float32) + b3_ref[...]
    z_max = jnp.max(z, axis=-1, keepdims=True)
    z_shift = z - z_max
    lse = jnp.log(jnp.sum(jnp.exp(z_shift), axis=-1, keepdims=True))
    out_ref[...] = (z_shift - lse).astype(out_ref.dtype)


def viterbinet_dropout_forward(x, params, *, dropout_p, training=False, seed=0,
                               tile_n=1024):
    """params = (w1, b1, w2, b2, w3, b3); wi is (in, out) f32, bi is (1, out) f32."""
    w1, b1, w2, b2, w3, b3 = params
    n, d_in = x.shape
    h1_dim, h2_dim, d_out = w1.shape[1], w2.shape[1], w3.shape[1]

    apply_mask = bool(training) and 0.0 < float(dropout_p) < 1.0
    drop_all = bool(training) and float(dropout_p) >= 1.0

    # Fold the inverted-dropout scale into the *following* layer's weights so the
    # kernel only multiplies by a binary {0,1} mask.
    if apply_mask:
        scale = 1.0 / (1.0 - float(dropout_p))
        w2 = w2 * scale
        w3 = w3 * scale

    # ---- pad feature dims to 128 lanes ---------------------------------------
    h1p = _round_up(h1_dim, _LANE)
    h2p = _round_up(h2_dim, _LANE)
    dop = _round_up(d_out, _LANE)

    def pad2(a, rows, cols, fill=0.0):
        return jnp.pad(a, ((0, rows - a.shape[0]), (0, cols - a.shape[1])),
                       constant_values=fill)

    w1p = pad2(w1, d_in, h1p).astype(jnp.bfloat16)
    b1p = pad2(b1, 1, h1p).astype(jnp.float32)
    w2p = pad2(w2, h1p, h2p).astype(jnp.bfloat16)
    b2p = pad2(b2, 1, h2p).astype(jnp.float32)
    w3p = pad2(w3, h2p, dop).astype(jnp.bfloat16)
    b3p = pad2(b3, 1, dop, fill=_NEG_PAD_BIAS).astype(jnp.float32)

    # ---- pad / tile the batch dimension ---------------------------------------
    n_pad = _round_up(n, _SUBLANE)
    tile = min(int(tile_n), n_pad)
    n_pad = _round_up(n_pad, tile)
    x_p = jnp.pad(x.astype(jnp.float32), ((0, n_pad - n), (0, 0)))
    grid = (n_pad // tile,)

    # ---- dropout keep-masks (generated host-side; lowers on any backend) ------
    extra_inputs = []
    extra_specs = []
    mask_bytes = 0
    if apply_mask:
        key = jax.random.PRNGKey(int(seed))
        k1, k2 = jax.random.split(key)
        keep_p = 1.0 - float(dropout_p)
        m1 = jax.random.bernoulli(k1, keep_p, (n_pad, h1p)).astype(jnp.bfloat16)
        m2 = jax.random.bernoulli(k2, keep_p, (n_pad, h2p)).astype(jnp.bfloat16)
        extra_inputs = [m1, m2]
        extra_specs = [
            pl.BlockSpec((tile, h1p), lambda i: (i, 0)),
            pl.BlockSpec((tile, h2p), lambda i: (i, 0)),
        ]
        mask_bytes = (m1.size + m2.size) * 2

    kernel = functools.partial(
        _viterbinet_kernel, apply_mask=apply_mask, drop_all=drop_all,
    )

    in_specs = [
        pl.BlockSpec((tile, d_in), lambda i: (i, 0)),   # x tile (pipelined)
        pl.BlockSpec((d_in, h1p), lambda i: (0, 0)),    # w1 (VMEM-resident)
        pl.BlockSpec((1, h1p), lambda i: (0, 0)),       # b1
        pl.BlockSpec((h1p, h2p), lambda i: (0, 0)),     # w2
        pl.BlockSpec((1, h2p), lambda i: (0, 0)),       # b2
        pl.BlockSpec((h2p, dop), lambda i: (0, 0)),     # w3
        pl.BlockSpec((1, dop), lambda i: (0, 0)),       # b3
    ] + extra_specs

    cost = pl.CostEstimate(
        flops=2 * n_pad * (d_in * h1p + h1p * h2p + h2p * dop),
        transcendentals=n_pad * (h1p + dop),
        bytes_accessed=(x_p.size * 4 + n_pad * dop * 4
                        + (w1p.size + w2p.size + w3p.size) * 2
                        + (b1p.size + b2p.size + b3p.size) * 4
                        + mask_bytes),
    )

    out_padded = pl.pallas_call(
        kernel,
        out_shape=jax.ShapeDtypeStruct((n_pad, dop), jnp.float32),
        grid=grid,
        in_specs=in_specs,
        out_specs=pl.BlockSpec((tile, dop), lambda i: (i, 0)),
        compiler_params=pltpu.CompilerParams(
            dimension_semantics=("parallel",)),   # megacore split on v7x
        cost_estimate=cost,
    )(x_p, w1p, b1p, w2p, b2p, w3p, b3p, *extra_inputs)

    return out_padded[:n, :d_out]


def init_params(key, d_in, h1, h2, d_out):
    """PyTorch nn.Linear-style init: U(-1/sqrt(fan_in), 1/sqrt(fan_in))."""
    ks = jax.random.split(key, 6)

    def lin(kw, kb, fan_in, fan_out):
        bound = 1.0 / jnp.sqrt(float(fan_in))
        w = jax.random.uniform(kw, (fan_in, fan_out), jnp.float32, -bound, bound)
        b = jax.random.uniform(kb, (1, fan_out), jnp.float32, -bound, bound)
        return w, b

    w1, b1 = lin(ks[0], ks[1], d_in, h1)
    w2, b2 = lin(ks[2], ks[3], h1, h2)
    w3, b3 = lin(ks[4], ks[5], h2, d_out)
    return (w1, b1, w2, b2, w3, b3)


if __name__ == "__main__":
    # Small ViterbiNet-like dims: D_in=4, H1=64, H2=32, D_out=16, batch N=16.
    N, D_IN, H1, H2, D_OUT = 16, 4, 64, 32, 16
    DROPOUT_P = 0.2

    key = jax.random.PRNGKey(0)
    kx, kp = jax.random.split(key)
    x = jax.random.normal(kx, (N, D_IN), dtype=jnp.float32)
    params = init_params(kp, D_IN, H1, H2, D_OUT)

    # ---- eval mode (dropout == identity, matches module.eval()) --------------
    out = viterbinet_dropout_forward(x, params, dropout_p=DROPOUT_P, training=False)
    out = jax.block_until_ready(out)
    assert out.shape == (N, D_OUT)

    # Pure-JAX f32 reference (kernel uses bf16 MXU inputs -> loose tolerance).
    w1, b1, w2, b2, w3, b3 = params
    h1 = jnp.tanh(x @ w1 + b1)
    h2 = jax.nn.relu(h1 @ w2 + b2)
    ref = jax.nn.log_softmax(h2 @ w3 + b3, axis=-1)
    assert jnp.allclose(out, ref, atol=1e-1), float(jnp.max(jnp.abs(out - ref)))
    assert jnp.allclose(jnp.sum(jnp.exp(out), axis=-1), 1.0, atol=1e-4)

    # ---- training mode (exercises the dropout-mask path) ----------------------
    out_tr = viterbinet_dropout_forward(x, params, dropout_p=DROPOUT_P,
                                        training=True, seed=123)
    out_tr = jax.block_until_ready(out_tr)
    assert out_tr.shape == (N, D_OUT)
    # log_softmax output must still normalize even with dropout applied upstream.
    assert jnp.allclose(jnp.sum(jnp.exp(out_tr), axis=-1), 1.0, atol=1e-4)

    print("KERNEL_OK")
</pallas_src>

<mosaic_0001>
module attributes {stable_mosaic.version = 11 : i64} {
  func.func @_viterbinet_kernel(%arg0: i32, %arg1: memref<16x4xf32, #tpu.memory_space<vmem>>, %arg2: memref<4x128xbf16, #tpu.memory_space<vmem>>, %arg3: memref<1x128xf32, #tpu.memory_space<vmem>>, %arg4: memref<128x128xbf16, #tpu.memory_space<vmem>>, %arg5: memref<1x128xf32, #tpu.memory_space<vmem>>, %arg6: memref<128x128xbf16, #tpu.memory_space<vmem>>, %arg7: memref<1x128xf32, #tpu.memory_space<vmem>>, %arg8: memref<16x128xf32, #tpu.memory_space<vmem>>) attributes {dimension_semantics = [#tpu.dimension_semantics<parallel>], iteration_bounds = array<i64: 1>, scalar_prefetch = 0 : i64, scratch_operands = 0 : i64, tpu.core_type = #tpu.core_type<tc>, window_params = [{transform_indices = @transform_0, window_bounds = array<i64: 16, 4>}, {pipeline_mode = #tpu.pipeline_mode<synchronous>, transform_indices = @transform_1, window_bounds = array<i64: 4, 128>}, {pipeline_mode = #tpu.pipeline_mode<synchronous>, transform_indices = @transform_2, window_bounds = array<i64: 1, 128>}, {pipeline_mode = #tpu.pipeline_mode<synchronous>, transform_indices = @transform_3, window_bounds = array<i64: 128, 128>}, {pipeline_mode = #tpu.pipeline_mode<synchronous>, transform_indices = @transform_4, window_bounds = array<i64: 1, 128>}, {pipeline_mode = #tpu.pipeline_mode<synchronous>, transform_indices = @transform_5, window_bounds = array<i64: 128, 128>}, {pipeline_mode = #tpu.pipeline_mode<synchronous>, transform_indices = @transform_6, window_bounds = array<i64: 1, 128>}, {transform_indices = @transform_7, window_bounds = array<i64: 16, 128>}]} {
    %c0 = arith.constant 0 : index
    %c0_0 = arith.constant 0 : index
    %0 = vector.load %arg1[%c0, %c0_0] : memref<16x4xf32, #tpu.memory_space<vmem>>, vector<16x4xf32>
    %1 = arith.truncf %0 : vector<16x4xf32> to vector<16x4xbf16>
    %c0_1 = arith.constant 0 : index
    %c0_2 = arith.constant 0 : index
    %2 = vector.load %arg2[%c0_1, %c0_2] : memref<4x128xbf16, #tpu.memory_space<vmem>>, vector<4x128xbf16>
    %cst = arith.constant dense<0.000000e+00> : vector<16x128xf32>
    %3 = tpu.matmul %1, %2, %cst {dimension_numbers = #tpu.dot_dimension_numbers<[1], [0], [0], [1], [0, 0, 1, 1], [], []>} : vector<16x4xbf16>, vector<4x128xbf16>, vector<16x128xf32> -> vector<16x128xf32>
    %c0_3 = arith.constant 0 : index
    %c0_4 = arith.constant 0 : index
    %4 = vector.load %arg3[%c0_3, %c0_4] : memref<1x128xf32, #tpu.memory_space<vmem>>, vector<1x128xf32>
    %5 = vector.broadcast %4 : vector<1x128xf32> to vector<16x128xf32>
    %6 = arith.addf %3, %5 : vector<16x128xf32>
    %7 = math.tanh %6 : vector<16x128xf32>
    %8 = arith.truncf %7 : vector<16x128xf32> to vector<16x128xbf16>
    %c0_5 = arith.constant 0 : index
    %c0_6 = arith.constant 0 : index
    %9 = vector.load %arg4[%c0_5, %c0_6] : memref<128x128xbf16, #tpu.memory_space<vmem>>, vector<128x128xbf16>
    %cst_7 = arith.constant dense<0.000000e+00> : vector<16x128xf32>
    %10 = tpu.matmul %8, %9, %cst_7 {dimension_numbers = #tpu.dot_dimension_numbers<[1], [0], [0], [1], [0, 0, 1, 1], [], []>} : vector<16x128xbf16>, vector<128x128xbf16>, vector<16x128xf32> -> vector<16x128xf32>
    %c0_8 = arith.constant 0 : index
    %c0_9 = arith.constant 0 : index
    %11 = vector.load %arg5[%c0_8, %c0_9] : memref<1x128xf32, #tpu.memory_space<vmem>>, vector<1x128xf32>
    %12 = vector.broadcast %11 : vector<1x128xf32> to vector<16x128xf32>
    %13 = arith.addf %10, %12 : vector<16x128xf32>
    %cst_10 = arith.constant 0.000000e+00 : f32
    %14 = vector.broadcast %cst_10 : f32 to vector<16x128xf32>
    %15 = arith.maximumf %13, %14 : vector<16x128xf32>
    %16 = arith.truncf %15 : vector<16x128xf32> to vector<16x128xbf16>
    %c0_11 = arith.constant 0 : index
    %c0_12 = arith.constant 0 : index
    %17 = vector.load %arg6[%c0_11, %c0_12] : memref<128x128xbf16, #tpu.memory_space<vmem>>, vector<128x128xbf16>
    %cst_13 = arith.constant dense<0.000000e+00> : vector<16x128xf32>
    %18 = tpu.matmul %16, %17, %cst_13 {dimension_numbers = #tpu.dot_dimension_numbers<[1], [0], [0], [1], [0, 0, 1, 1], [], []>} : vector<16x128xbf16>, vector<128x128xbf16>, vector<16x128xf32> -> vector<16x128xf32>
    %c0_14 = arith.constant 0 : index
    %c0_15 = arith.constant 0 : index
    %19 = vector.load %arg7[%c0_14, %c0_15] : memref<1x128xf32, #tpu.memory_space<vmem>>, vector<1x128xf32>
    %20 = vector.broadcast %19 : vector<1x128xf32> to vector<16x128xf32>
    %21 = arith.addf %18, %20 : vector<16x128xf32>
    %cst_16 = arith.constant dense<0xFF800000> : vector<16xf32>
    %22 = vector.multi_reduction <maximumf>, %21, %cst_16 [1] : vector<16x128xf32> to vector<16xf32>
    %23 = vector.shape_cast %22 : vector<16xf32> to vector<16x1xf32>
    %24 = vector.broadcast %23 : vector<16x1xf32> to vector<16x128xf32>
    %25 = arith.subf %21, %24 : vector<16x128xf32>
    %26 = math.exp %25 : vector<16x128xf32>
    %cst_17 = arith.constant dense<0.000000e+00> : vector<16xf32>
    %27 = vector.multi_reduction <add>, %26, %cst_17 [1] : vector<16x128xf32> to vector<16xf32>
    %28 = vector.shape_cast %27 : vector<16xf32> to vector<16x1xf32>
    %29 = math.log %28 : vector<16x1xf32>
    %30 = vector.broadcast %29 : vector<16x1xf32> to vector<16x128xf32>
    %31 = arith.subf %25, %30 : vector<16x128xf32>
    %c0_18 = arith.constant 0 : index
    %c0_19 = arith.constant 0 : index
    %32 = vector.load %arg8[%c0_18, %c0_19] : memref<16x128xf32, #tpu.memory_space<vmem>>, vector<16x128xf32>
    tpu.vector_store %arg8[%c0_18, %c0_19], %31 {strides = array<i32>} : memref<16x128xf32, #tpu.memory_space<vmem>>, vector<16x128xf32>,
    return
  }
  func.func @transform_0(%arg0: i32) -> (i32, i32) {
    %c0_i32 = arith.constant 0 : i32
    %c0_i32_0 = arith.constant 0 : i32
    return %arg0, %c0_i32 : i32, i32
  }
  func.func @transform_1(%arg0: i32) -> (i32, i32) {
    %c0_i32 = arith.constant 0 : i32
    %c0_i32_0 = arith.constant 0 : i32
    %c0_i32_1 = arith.constant 0 : i32
    return %c0_i32, %c0_i32_0 : i32, i32
  }
  func.func @transform_2(%arg0: i32) -> (i32, i32) {
    %c0_i32 = arith.constant 0 : i32
    %c0_i32_0 = arith.constant 0 : i32
    %c0_i32_1 = arith.constant 0 : i32
    return %c0_i32, %c0_i32_0 : i32, i32
  }
  func.func @transform_3(%arg0: i32) -> (i32, i32) {
    %c0_i32 = arith.constant 0 : i32
    %c0_i32_0 = arith.constant 0 : i32
    %c0_i32_1 = arith.constant 0 : i32
    return %c0_i32, %c0_i32_0 : i32, i32
  }
  func.func @transform_4(%arg0: i32) -> (i32, i32) {
    %c0_i32 = arith.constant 0 : i32
    %c0_i32_0 = arith.constant 0 : i32
    %c0_i32_1 = arith.constant 0 : i32
    return %c0_i32, %c0_i32_0 : i32, i32
  }
  func.func @transform_5(%arg0: i32) -> (i32, i32) {
    %c0_i32 = arith.constant 0 : i32
    %c0_i32_0 = arith.constant 0 : i32
    %c0_i32_1 = arith.constant 0 : i32
    return %c0_i32, %c0_i32_0 : i32, i32
  }
  func.func @transform_6(%arg0: i32) -> (i32, i32) {
    %c0_i32 = arith.constant 0 : i32
    %c0_i32_0 = arith.constant 0 : i32
    %c0_i32_1 = arith.constant 0 : i32
    return %c0_i32, %c0_i32_0 : i32, i32
  }
  func.func @transform_7(%arg0: i32) -> (i32, i32) {
    %c0_i32 = arith.constant 0 : i32
    %c0_i32_0 = arith.constant 0 : i32
    return %arg0, %c0_i32 : i32, i32
  }
}

</mosaic_0001>

<bundles_post_ra>
// kernel: tpu_custom_call.1
= control target key start
LH: loop header
LB: loop body
LE: loop exit
PB: predicated region body
PF: predicated region fallthrough
CT: control target
= control target key end

     0   :  { %12 = vsyncpa [#allocation3], 0  ;;  %s707_s0 = inlined_call_operand.vmem [shape: f32[16,4], index: 0, kind: input, shape index: {}]   ;;  %s708_s1 = inlined_call_operand.vmem [shape: bf16[4,128], index: 1, kind: input, shape index: {}]   ;;  %s709_s2 = inlined_call_operand.vmem [shape: f32[1,128], index: 2, kind: input, shape index: {}]   ;;  %s710_s3 = inlined_call_operand.hbm [shape: bf16[128,128], index: 3, kind: input, shape index: {}]   ;;  %s711_s4 = inlined_call_operand.vmem [shape: f32[1,128], index: 4, kind: input, shape index: {}]   ;;  %s712_s5 = inlined_call_operand.hbm [shape: bf16[128,128], index: 5, kind: input, shape index: {}]   ;;  %s713_s6 = inlined_call_operand.vmem [shape: f32[1,128], index: 6, kind: input, shape index: {}]   ;;  %s714_s7 = inlined_call_operand.hbm [shape: f32[16,128], index: 7, kind: output, shape index: {}]  }
   0x1   :  { %13 = vsyncpa [#allocation6], 0 }
   0x2   :  { %14 = vsyncpa [#allocation4], 0  ;;  %s581_s24 = smov [#allocation2]   ;;  %s509_s28 = scalar_lea.hbm %s710_s3, 1024 }
   0x3   :  { %s26_s25 = sshll.u32 %s581_s24, 4  ;;  %p510_p0 = scmp.ne.s32.totalorder %s710_s3, %s509_s28  ;;  %s27_s25 = int_to_ptr.vmem [resolvable:$true] %s26_s25 }
   0x4   :  { %p513_p1 = scmp.lt.u32.totalorder %s509_s28, %s710_s3 }
   0x6   :  { %p515_p2 = pnand %p513_p1, %p510_p0 }
   0x8   :  { %518 = shalt.err (!%p515_p2)
}
   0x9   :  { %s519_s10 = scalar_lea.vmem %s27_s25, 1024  ;;  %p524_p4 = scmp.lt.s32.totalorder %s27_s25, %s27_s25 }
   0xa   :  { %p520_p3 = scmp.ne.s32.totalorder %s27_s25, %s519_s10  ;;  %p525_p5 = scmp.lt.s32.totalorder %s519_s10, %s519_s10 }
   0xc   :  { %p526_p6 = por %p525_p5, %p524_p4 }
   0xe   :  { %p527_p7 = pnand %p526_p6, %p520_p3 }
  0x10   :  { %530 = shalt.err (!%p527_p7)
}
  0x11   :  { %s582_s11 = smov 64   ;;  %s583_s12 = smov 4  }
  0x12   :  { %32 = dma.hbm_to_vmem [thread:$0]  %s710_s3, 1024, %s27_s25, [#allocation3], %s582_s11, %s582_s11, %s583_s12  }
  0x13   :  { %s584_s15 = smov [#allocation5]   ;;  %s531_s19 = scalar_lea.hbm %s712_s5, 1024 }
  0x14   :  { %s40_s16 = sshll.u32 %s584_s15, 4  ;;  %p532_p8 = scmp.ne.s32.totalorder %s712_s5, %s531_s19  ;;  %s41_s16 = int_to_ptr.vmem [resolvable:$true] %s40_s16 }
  0x15   :  { %p535_p9 = scmp.lt.u32.totalorder %s531_s19, %s712_s5 }
  0x17   :  { %p537_p10 = pnand %p535_p9, %p532_p8 }
  0x19   :  { %540 = shalt.err (!%p537_p10)
}
  0x1a   :  { %s541_s24 = scalar_lea.vmem %s41_s16, 1024  ;;  %p546_p12 = scmp.lt.s32.totalorder %s41_s16, %s41_s16 }
  0x1b   :  { %p542_p11 = scmp.ne.s32.totalorder %s41_s16, %s541_s24  ;;  %p547_p13 = scmp.lt.s32.totalorder %s541_s24, %s541_s24 }
  0x1d   :  { %p548_p0 = por %p547_p13, %p546_p12 }
  0x1f   :  { %p549_p1 = pnand %p548_p0, %p542_p11 }
  0x21   :  { %552 = shalt.err (!%p549_p1)
}
  0x22   :  { %46 = dma.hbm_to_vmem [thread:$0]  %s712_s5, 1024, %s41_s16, [#allocation6], %s582_s11, %s582_s11, %s583_s12  }
  0x23   :  { %575 = dma.done.wait [#allocation3], 1024  }
  0x24   :  { %576 = vsyncadd [#allocation3], 4294966272 }
  0x25   :  { %577 = dma.done.wait [#allocation6], 1024  }
  0x26   :  { %578 = vsyncadd [#allocation6], 4294966272  ;;  %v585_v0 = vmov 0.0   ;;  %vm586_vm0 = vmmov 0   ;;  %vm71_vm1 = vcmask 1041408   ;;  %v56_v2 = vld [vmem:[%s707_s0] sm:$0xff] }
  0x27   :  { %426 = vmatprep.subr.bf16.mxu0 %v585_v0  ;;  %428 = vmatprep.mubr.msk.bf16.mxu0 %vm586_vm0, %v585_v0  ;;  %v59_v1 = vld [vmem:[%s708_s1] sm:$0x3]  ;;  %v57_v3 = vld [vmem:[%s707_s0 + $0x8] sm:$0xff]  ;;  %vm67_vm2 = vcmask 31744   ;;  %v483_v8 = vld [vmem:[#allocation2 + $0x10] sm:$0xff]  }
  0x28   :  { %432 = vmatprep.subr.bf16.mxu1 %v585_v0  ;;  %448 = vmatprep.mubr.msk.bf16.mxu1 %vm586_vm0, %v585_v0  ;;  %v73_v4 = vsel %vm71_vm1, %v59_v1, 0  ;;  %v58_v5 = vpack.c.bf16 %v57_v3, %v56_v2  ;;  %v481_v6 = vld [vmem:[#allocation2] sm:$0xff]   ;;  %v482_v7 = vld [vmem:[#allocation2 + $0x8] sm:$0xff]   ;;  %v484_v9 = vld [vmem:[#allocation2 + $0x18] sm:$0xff]  }
  0x29   :  { %427 = vmatpush3.bf16.msra.mxu0 %v73_v4  ;;  %433 = vmatpush3.bf16.msra.mxu1 %v481_v6  ;;  %v485_v10 = vld [vmem:[#allocation2 + $0x20] sm:$0xff]   ;;  %v486_v11 = vld [vmem:[#allocation2 + $0x28] sm:$0xff]   ;;  %v487_v12 = vld [vmem:[#allocation2 + $0x30] sm:$0xff]  }
  0x2a   :  { %452 = vmatprep.subr.bf16.mxu0 %v585_v0  ;;  %434 = vmatprep.subr.bf16.mxu1 %v585_v0  ;;  %v488_v13 = vld [vmem:[#allocation2 + $0x38] sm:$0xff]   ;;  %v489_v14 = vld [vmem:[#allocation5] sm:$0xff]   ;;  %v490_v15 = vld [vmem:[#allocation5 + $0x8] sm:$0xff]  }
  0x2b   :  { %v491_v16 = vld [vmem:[#allocation5 + $0x10] sm:$0xff]   ;;  %v492_v17 = vld [vmem:[#allocation5 + $0x18] sm:$0xff]   ;;  %v493_v18 = vld [vmem:[#allocation5 + $0x20] sm:$0xff]  }
  0x2c   :  { %429 = vmatmul.mubr.msk.bf16.vlgmr.msra.gmra.mrb[0].mxu0 %vm67_vm2, %v58_v5  ;;  %v494_v19 = vld [vmem:[#allocation5 + $0x28] sm:$0xff]   ;;  %v386_v20 = vld [vmem:[%s709_s2] ss:$0 sm:$0xff]  ;;  %v495_v30 = vld [vmem:[#allocation5 + $0x30] sm:$0xff]  }
  0x2d   :  { %468 = vmatprep.mubr.msk.bf16.mxu0 %vm586_vm0, %v585_v0  ;;  %435 = vmatpush3.bf16.msra.mxu1 %v482_v7  ;;  %v496_v31 = vld [vmem:[#allocation5 + $0x38] sm:$0xff]   ;;  %v388_v32 = vld [vmem:[%s711_s4] ss:$0 sm:$0xff]  ;;  %s587_s4 = smov [#allocation7]  }
  0x2e   :  { %436 = vmatprep.subr.bf16.mxu1 %v585_v0  ;;  %453 = vmatpush3.bf16.msra.mxu0 %v489_v14  ;;  %v397_v42 = vld [vmem:[%s713_s6] ss:$0 sm:$0xff]  ;;  %s373_s6 = sshll.u32 %s587_s4, 4  ;;  %s374_s6 = int_to_ptr.vmem [resolvable:$true] %s373_s6 }
  0x2f   :  { %454 = vmatprep.subr.bf16.mxu0 %v585_v0  ;;  %s553_s11 = scalar_lea.vmem %s374_s6, 256  ;;  %p558_p3 = scmp.lt.s32.totalorder %s374_s6, %s374_s6 }
  0x30   :  { %p554_p2 = scmp.ne.s32.totalorder %s374_s6, %s553_s11  ;;  %p559_p4 = scmp.lt.s32.totalorder %s553_s11, %s553_s11 }
  0x31   :  { %437 = vmatpush3.bf16.msra.mxu1 %v483_v8 }
  0x32   :  { %438 = vmatprep.subr.bf16.mxu1 %v585_v0  ;;  %455 = vmatpush3.bf16.msra.mxu0 %v490_v15  ;;  %p560_p5 = por %p559_p4, %p558_p3 }
  0x33   :  { %456 = vmatprep.subr.bf16.mxu0 %v585_v0 }
  0x34   :  { %p561_p6 = pnand %p560_p5, %p554_p2 }
  0x35   :  { %439 = vmatpush3.bf16.msra.mxu1 %v484_v9 }
  0x36   :  { %440 = vmatprep.subr.bf16.mxu1 %v585_v0  ;;  %457 = vmatpush3.bf16.msra.mxu0 %v491_v16 }
  0x37   :  { %458 = vmatprep.subr.bf16.mxu0 %v585_v0 }
  0x39   :  { %441 = vmatpush3.bf16.msra.mxu1 %v485_v10 }
  0x3a   :  { %442 = vmatprep.subr.bf16.mxu1 %v585_v0  ;;  %459 = vmatpush3.bf16.msra.mxu0 %v492_v17 }
  0x3b   :  { %460 = vmatprep.subr.bf16.mxu0 %v585_v0 }
  0x3d   :  { %443 = vmatpush3.bf16.msra.mxu1 %v486_v11 }
  0x3e   :  { %444 = vmatprep.subr.bf16.mxu1 %v585_v0  ;;  %461 = vmatpush3.bf16.msra.mxu0 %v493_v18 }
  0x3f   :  { %462 = vmatprep.subr.bf16.mxu0 %v585_v0 }
  0x41   :  { %445 = vmatpush3.bf16.msra.mxu1 %v487_v12 }
  0x42   :  { %446 = vmatprep.subr.bf16.mxu1 %v585_v0  ;;  %463 = vmatpush3.bf16.msra.mxu0 %v494_v19 }
  0x43   :  { %464 = vmatprep.subr.bf16.mxu0 %v585_v0 }
  0x45   :  { %447 = vmatpush3.bf16.msra.mxu1 %v488_v13 }
  0x46   :  { %465 = vmatpush3.bf16.msra.mxu0 %v495_v30 }
  0x47   :  { %466 = vmatprep.subr.bf16.mxu0 %v585_v0 }
  0x4a   :  { %467 = vmatpush3.bf16.msra.mxu0 %v496_v31 }
  0xff   :  { %v109_v21 = vpop.f32.mrb[0].mxu0 }
 0x100   :  { %v110_v22 = vadd.f32 %v386_v20, %v109_v21  ;;  %v430_v23 = vpop.f32.mrb[1].mxu0 }
 0x101   :  { %v112_v24 = vpop.f32.mrb[2].mxu0 }
 0x102   :  { %v113_v25 = vadd.f32 %v386_v20, %v112_v24  ;;  %v431_v26 = vpop.f32.mrb[3].mxu0  ;;  %497 = vtanh.f32 %v110_v22 }
 0x104   :  { %499 = vtanh.f32 %v113_v25 }
 0x10c   :  { %v498_v27 = vpop.eup %497 }
 0x10e   :  { %v500_v28 = vpop.eup %499 }
 0x10f   :  { %v118_v29 = vpack.c.bf16 %v500_v28, %v498_v27 }
 0x111   :  { %449 = vmatmul.mubr.bf16.vlgmr.msra.gmra.mrb[0].mxu1 %v118_v29 }
 0x1e4   :  { %v224_v33 = vpop.f32.mrb[0].mxu1 }
 0x1e5   :  { %v225_v34 = vadd.f32 %v388_v32, %v224_v33  ;;  %v450_v35 = vpop.f32.mrb[1].mxu1 }
 0x1e6   :  { %v227_v36 = vpop.f32.mrb[2].mxu1 }
 0x1e7   :  { %v228_v37 = vadd.f32 %v388_v32, %v227_v36  ;;  %v451_v38 = vpop.f32.mrb[3].mxu1  ;;  %v231_v39 = vmax.f32 %v225_v34, 0.0 }
 0x1e9   :  { %v232_v40 = vmax.f32 %v228_v37, 0.0 }
 0x1eb   :  { %v233_v41 = vpack.c.bf16 %v232_v40, %v231_v39 }
 0x1ed   :  { %469 = vmatmul.mubr.bf16.vlgmr.msra.gmra.mrb[4].mxu0 %v233_v41 }
 0x2c0   :  { %v339_v43 = vpop.f32.mrb[4].mxu0 }
 0x2c1   :  { %v340_v44 = vadd.f32 %v397_v42, %v339_v43  ;;  %v470_v45 = vpop.f32.mrb[5].mxu0 }
 0x2c2   :  { %v342_v46 = vpop.f32.mrb[6].mxu0 }
 0x2c3   :  { %346 = vmax.xlane.f32.xlu0 %v340_v44  ;;  %v471_v47 = vpop.f32.mrb[7].mxu0  ;;  %v343_v48 = vadd.f32 %v397_v42, %v342_v46 }
 0x2c7   :  { %348 = vmax.xlane.f32.xlu0 %v343_v48 }
 0x350   :  { %v347_v49 = vpop.xlane.xlu0 %346 }
 0x351   :  { %v350_v50 = vsub.f32 %v340_v44, %v347_v49 }
 0x353   :  { %v352_v51 = vmul.f32 1.442695, %v350_v50 }
 0x354   :  { %v349_v52 = vpop.xlane.xlu0 %348 }
 0x355   :  { %v351_v53 = vsub.f32 %v343_v48, %v349_v52  ;;  %501 = vpow2.f32 %v352_v51 }
 0x357   :  { %v354_v54 = vmul.f32 1.442695, %v351_v53 }
 0x359   :  { %503 = vpow2.f32 %v354_v54 }
 0x35f   :  { %v502_v55 = vpop.eup %501 }
 0x360   :  { %356 = vadd.xlane.f32.xlu1 %v502_v55 }
 0x363   :  { %v504_v56 = vpop.eup %503 }
 0x364   :  { %358 = vadd.xlane.f32.xlu1 %v504_v56 }
 0x3ed   :  { %v357_v57 = vpop.xlane.xlu1 %356 }
 0x3ee   :  { %505 = vlog2.f32 %v357_v57 }
 0x3f1   :  { %v359_v58 = vpop.xlane.xlu1 %358 }
 0x3f2   :  { %507 = vlog2.f32 %v359_v58 }
 0x3f8   :  { %v506_v59 = vpop.eup %505 }
 0x3f9   :  { %v361_v60 = vmul.f32 0.6931472, %v506_v59 }
 0x3fb   :  { %v364_v61 = vsub.f32 %v350_v50, %v361_v60 }
 0x3fc   :  { %v508_v62 = vpop.eup %507 }
 0x3fd   :  { %366 = vst [vmem:[#allocation7] sm:$0xff] %v364_v61  ;;  %v363_v63 = vmul.f32 0.6931472, %v508_v62 }
 0x3ff   :  { %v365_v0 = vsub.f32 %v351_v53, %v363_v63 }
 0x401   :  { %367 = vst [vmem:[#allocation7 + $0x8] sm:$0xff] %v365_v0 }
 0x402   :  { %564 = shalt.err (!%p561_p6)
}
 0x403   :  { %s565_s14 = scalar_lea.hbm %s714_s7, 256 }
 0x404   :  { %p566_p7 = scmp.ne.s32.totalorder %s714_s7, %s565_s14  ;;  %p569_p8 = scmp.lt.u32.totalorder %s565_s14, %s714_s7 }
 0x406   :  { %p571_p9 = pnand %p569_p8, %p566_p7 }
 0x408   :  { %574 = shalt.err (!%p571_p9)
}
 0x409   :  { %s588_s19 = smov 128   ;;  %s589_s20 = smov 8  }
 0x40a   :  { %379 = dma.vmem_to_hbm [thread:$0]  %s374_s6, 256, %s714_s7, [#allocation4], %s588_s19, %s588_s19, %s589_s20  }
 0x40b   :  { %579 = dma.done.wait [#allocation4], 256  }
 0x40c   :  { %580 = vsyncadd [#allocation4], 4294967040 }
 0x40d   :  { %383 = vsyncpa [#allocation3], 1 }
 0x40e   :  { %384 = vsyncpa [#allocation6], 1 }
 0x40f   :  { %385 = vsyncpa [#allocation4], 1 }

</bundles_post_ra>
